<compile_context>
chip_gen: v5e
topology: v5e:2x2
jax: 0.10.0
libtpu: 0.0.40
codegen_flags: <defaults>
</compile_context>

<pallas_src>
import functools

import jax
import jax.numpy as jnp
from jax.experimental import pallas as pl
from jax.experimental.pallas import tpu as pltpu


def _round_up(x: int, m: int) -> int:
    return (x + m - 1) // m * m


def _vae_encoder_kernel(x_ref, w1_ref, b1_ref, w2_ref, b2_ref, eps_ref,
                        out_ref, *, d_lat_p):
    # encoder: h = relu(x @ W1 + b1)   (bf16 MXU inputs, f32 accumulate)
    h = jnp.dot(x_ref[...], w1_ref[...], preferred_element_type=jnp.float32)
    h = jnp.maximum(h + b1_ref[...], 0.0)

    # reparameterization layer: ONE fused MXU pass over [d_hid_p, 2*d_lat_p],
    # split at the 128-lane-aligned boundary d_lat_p (mu lanes | logvar lanes).
    stats = jnp.dot(h.astype(jnp.bfloat16), w2_ref[...],
                    preferred_element_type=jnp.float32) + b2_ref[...]
    mu = stats[:, :d_lat_p]
    logvar = stats[:, d_lat_p:]

    # z = mu + std * eps   (f32 elementwise; exp goes to the EUP)
    std = jnp.exp(0.5 * logvar)
    z = mu + std * eps_ref[...].astype(jnp.float32)

    # Single packed lane-dense output slab: [z | mu | logvar], bf16.
    out_ref[:, :d_lat_p] = z.astype(out_ref.dtype)
    out_ref[:, d_lat_p:2 * d_lat_p] = mu.astype(out_ref.dtype)
    out_ref[:, 2 * d_lat_p:] = logvar.astype(out_ref.dtype)


def _resident_spec(shape):
    """Grid-invariant (constant index_map) block, single-buffered."""
    try:
        return pl.BlockSpec(shape, lambda i: (0, 0),
                            pipeline_mode=pl.Buffered(1))
    except TypeError:  # older Pallas without pipeline_mode kwarg
        return pl.BlockSpec(shape, lambda i: (0, 0))


def prepare_vae_encoder_params(w1, b1, w2, b2, d_lat):
    """One-time parameter prep (hoisted out of the forward path).

    w1: [d_hid, d_in] (PyTorch layout), b1: [d_hid],
    w2: [2*d_lat, d_hid], b2: [2*d_lat].
    Returns lane-padded, pre-transposed bf16 weights (W2 fused as mu|logvar
    along the lane axis, split points 128-aligned) + f32 biases.
    """
    d_hid, d_in = w1.shape
    assert w2.shape[0] == 2 * d_lat, "w2 output dim must be exactly 2*d_lat"

    d_in_p = _round_up(d_in, 128)
    d_hid_p = _round_up(d_hid, 128)
    d_lat_p = _round_up(d_lat, 128)

    w1_t = jnp.asarray(w1, jnp.float32).T                     # [d_in, d_hid]
    w2_mu_t = jnp.asarray(w2[:d_lat], jnp.float32).T          # [d_hid, d_lat]
    w2_lv_t = jnp.asarray(w2[d_lat:], jnp.float32).T          # [d_hid, d_lat]

    w1_p = jnp.zeros((d_in_p, d_hid_p), jnp.float32)
    w1_p = w1_p.at[:d_in, :d_hid].set(w1_t).astype(jnp.bfloat16)

    # Fused second-layer weight: mu weights in lanes [0, d_lat_p),
    # logvar weights in lanes [d_lat_p, 2*d_lat_p).
    w2_p = jnp.zeros((d_hid_p, 2 * d_lat_p), jnp.float32)
    w2_p = w2_p.at[:d_hid, :d_lat].set(w2_mu_t)
    w2_p = w2_p.at[:d_hid, d_lat_p:d_lat_p + d_lat].set(w2_lv_t)
    w2_p = w2_p.astype(jnp.bfloat16)

    b1_p = jnp.zeros((1, d_hid_p), jnp.float32).at[0, :d_hid].set(
        jnp.asarray(b1, jnp.float32))
    b2_p = jnp.zeros((1, 2 * d_lat_p), jnp.float32)
    b2_p = b2_p.at[0, :d_lat].set(jnp.asarray(b2[:d_lat], jnp.float32))
    b2_p = b2_p.at[0, d_lat_p:d_lat_p + d_lat].set(
        jnp.asarray(b2[d_lat:], jnp.float32))

    return (w1_p, b1_p, w2_p, b2_p)


def _pad2(a, rows, cols, dtype):
    """Cast + zero-pad to (rows, cols); skips the pad when already aligned."""
    a = a.astype(dtype)
    pr, pc = rows - a.shape[0], cols - a.shape[1]
    if pr or pc:
        a = jnp.pad(a, ((0, pr), (0, pc)))
    return a


@jax.jit
def vae_encoder_forward(x, eps, params):
    """x: [B, d_in] ; eps: [B, d_lat] ; params from prepare_vae_encoder_params.

    Returns (z, mu, logvar), each [B, d_lat] float32.
    """
    w1_p, b1_p, w2_p, b2_p = params
    d_in_p, d_hid_p = w1_p.shape
    d_lat_p = w2_p.shape[1] // 2

    B, d_in = x.shape
    d_lat = eps.shape[1]

    # Batch tile: 16-sublane aligned (bf16 min tile), as large as makes sense.
    tm = min(1024, _round_up(B, 16))
    B_p = _round_up(B, tm)
    # Prefer >=2 grid steps so v7x's two TensorCores both get work.
    if B_p // tm < 2 and tm > 16:
        tm = max(16, _round_up(-(-B // 2), 16))
        B_p = _round_up(B, tm)
    grid = (B_p // tm,)

    # Activations (bf16 for the MXU) and eps (bf16 stream, f32 math in-kernel).
    x_p = _pad2(x, B_p, d_in_p, jnp.bfloat16)
    eps_p = _pad2(eps, B_p, d_lat_p, jnp.bfloat16)

    # Generation-aware VMEM budget: half of physical capacity
    # (32 MiB on v7x, 64 MiB on v5e/v6e).
    try:
        vmem_cap = pltpu.get_tpu_info().vmem_capacity_bytes
    except Exception:
        vmem_cap = 64 * 1024 * 1024
    vmem_limit = min(vmem_cap // 2, 64 * 1024 * 1024)

    batch_spec = lambda ncols: pl.BlockSpec((tm, ncols), lambda i: (i, 0))

    out_p = pl.pallas_call(
        functools.partial(_vae_encoder_kernel, d_lat_p=d_lat_p),
        out_shape=jax.ShapeDtypeStruct((B_p, 3 * d_lat_p), jnp.bfloat16),
        grid=grid,
        in_specs=[
            batch_spec(d_in_p),                      # x
            _resident_spec((d_in_p, d_hid_p)),       # w1
            _resident_spec((1, d_hid_p)),            # b1
            _resident_spec((d_hid_p, 2 * d_lat_p)),  # w2 (mu | logvar)
            _resident_spec((1, 2 * d_lat_p)),        # b2 (mu | logvar)
            batch_spec(d_lat_p),                     # eps
        ],
        out_specs=batch_spec(3 * d_lat_p),
        compiler_params=pltpu.CompilerParams(
            dimension_semantics=("parallel",),
            vmem_limit_bytes=vmem_limit,
        ),
    )(x_p, w1_p, b1_p, w2_p, b2_p, eps_p)

    z = out_p[:B, :d_lat].astype(jnp.float32)
    mu = out_p[:B, d_lat_p:d_lat_p + d_lat].astype(jnp.float32)
    logvar = out_p[:B, 2 * d_lat_p:2 * d_lat_p + d_lat].astype(jnp.float32)
    return z, mu, logvar


def _reference(x, w1, b1, w2, b2, eps):
    h = jnp.maximum(x @ w1.T + b1, 0.0)
    stats = h @ w2.T + b2
    d_lat = eps.shape[-1]
    mu, logvar = stats[:, :d_lat], stats[:, d_lat:]
    z = mu + jnp.exp(0.5 * logvar) * eps
    return z, mu, logvar


if __name__ == "__main__":
    B, d_in, d_hid, d_lat = 8, 32, 64, 16

    key = jax.random.PRNGKey(0)
    kx, kw1, kb1, kw2, kb2, keps = jax.random.split(key, 6)

    x = jax.random.normal(kx, (B, d_in), jnp.float32)
    # Deterministic, PyTorch-Linear-style init (uniform in +/- 1/sqrt(fan_in)).
    w1 = jax.random.uniform(kw1, (d_hid, d_in), jnp.float32,
                            -1.0 / d_in ** 0.5, 1.0 / d_in ** 0.5)
    b1 = jax.random.uniform(kb1, (d_hid,), jnp.float32,
                            -1.0 / d_in ** 0.5, 1.0 / d_in ** 0.5)
    w2 = jax.random.uniform(kw2, (2 * d_lat, d_hid), jnp.float32,
                            -1.0 / d_hid ** 0.5, 1.0 / d_hid ** 0.5)
    b2 = jax.random.uniform(kb2, (2 * d_lat,), jnp.float32,
                            -1.0 / d_hid ** 0.5, 1.0 / d_hid ** 0.5)
    eps = jax.random.normal(keps, (B, d_lat), jnp.float32)

    # One-time parameter preparation (transpose/fuse/pad/cast), hoisted out of
    # the forward path.
    params = jax.block_until_ready(
        prepare_vae_encoder_params(w1, b1, w2, b2, d_lat))

    z, mu, logvar = vae_encoder_forward(x, eps, params)
    jax.block_until_ready((z, mu, logvar))

    z_ref, mu_ref, lv_ref = _reference(x, w1, b1, w2, b2, eps)
    # bf16 matmul inputs + bf16 packed outputs (f32 accumulation) -> loosened
    # tolerance vs the f32 reference.
    assert jnp.allclose(mu, mu_ref, atol=3e-2, rtol=3e-2)
    assert jnp.allclose(logvar, lv_ref, atol=3e-2, rtol=3e-2)
    assert jnp.allclose(z, z_ref, atol=3e-2, rtol=3e-2)

    print("KERNEL_OK")
</pallas_src>

<mosaic_0001>
module attributes {stable_mosaic.version = 11 : i64} {
  func.func @_vae_encoder_kernel(%arg0: i32, %arg1: memref<16x128xbf16, #tpu.memory_space<vmem>>, %arg2: memref<128x128xbf16, #tpu.memory_space<vmem>>, %arg3: memref<1x128xf32, #tpu.memory_space<vmem>>, %arg4: memref<128x256xbf16, #tpu.memory_space<vmem>>, %arg5: memref<1x256xf32, #tpu.memory_space<vmem>>, %arg6: memref<16x128xbf16, #tpu.memory_space<vmem>>, %arg7: memref<16x384xbf16, #tpu.memory_space<vmem>>) attributes {dimension_semantics = [#tpu.dimension_semantics<parallel>], iteration_bounds = array<i64: 1>, scalar_prefetch = 0 : i64, scratch_operands = 0 : i64, tpu.core_type = #tpu.core_type<tc>, window_params = [{transform_indices = @transform_0, window_bounds = array<i64: 16, 128>}, {pipeline_mode = #tpu.pipeline_mode<synchronous>, transform_indices = @transform_1, window_bounds = array<i64: 128, 128>}, {pipeline_mode = #tpu.pipeline_mode<synchronous>, transform_indices = @transform_2, window_bounds = array<i64: 1, 128>}, {pipeline_mode = #tpu.pipeline_mode<synchronous>, transform_indices = @transform_3, window_bounds = array<i64: 128, 256>}, {pipeline_mode = #tpu.pipeline_mode<synchronous>, transform_indices = @transform_4, window_bounds = array<i64: 1, 256>}, {transform_indices = @transform_5, window_bounds = array<i64: 16, 128>}, {transform_indices = @transform_6, window_bounds = array<i64: 16, 384>}]} {
    %c0 = arith.constant 0 : index
    %c0_0 = arith.constant 0 : index
    %0 = vector.load %arg1[%c0, %c0_0] : memref<16x128xbf16, #tpu.memory_space<vmem>>, vector<16x128xbf16>
    %c0_1 = arith.constant 0 : index
    %c0_2 = arith.constant 0 : index
    %1 = vector.load %arg2[%c0_1, %c0_2] : memref<128x128xbf16, #tpu.memory_space<vmem>>, vector<128x128xbf16>
    %cst = arith.constant dense<0.000000e+00> : vector<16x128xf32>
    %2 = tpu.matmul %0, %1, %cst {dimension_numbers = #tpu.dot_dimension_numbers<[1], [0], [0], [1], [0, 0, 1, 1], [], []>} : vector<16x128xbf16>, vector<128x128xbf16>, vector<16x128xf32> -> vector<16x128xf32>
    %c0_3 = arith.constant 0 : index
    %c0_4 = arith.constant 0 : index
    %3 = vector.load %arg3[%c0_3, %c0_4] : memref<1x128xf32, #tpu.memory_space<vmem>>, vector<1x128xf32>
    %4 = vector.broadcast %3 : vector<1x128xf32> to vector<16x128xf32>
    %5 = arith.addf %2, %4 : vector<16x128xf32>
    %cst_5 = arith.constant 0.000000e+00 : f32
    %6 = vector.broadcast %cst_5 : f32 to vector<16x128xf32>
    %7 = arith.maximumf %5, %6 : vector<16x128xf32>
    %8 = arith.truncf %7 : vector<16x128xf32> to vector<16x128xbf16>
    %c0_6 = arith.constant 0 : index
    %c0_7 = arith.constant 0 : index
    %9 = vector.load %arg4[%c0_6, %c0_7] : memref<128x256xbf16, #tpu.memory_space<vmem>>, vector<128x256xbf16>
    %cst_8 = arith.constant dense<0.000000e+00> : vector<16x256xf32>
    %10 = tpu.matmul %8, %9, %cst_8 {dimension_numbers = #tpu.dot_dimension_numbers<[1], [0], [0], [1], [0, 0, 1, 1], [], []>} : vector<16x128xbf16>, vector<128x256xbf16>, vector<16x256xf32> -> vector<16x256xf32>
    %c0_9 = arith.constant 0 : index
    %c0_10 = arith.constant 0 : index
    %11 = vector.load %arg5[%c0_9, %c0_10] : memref<1x256xf32, #tpu.memory_space<vmem>>, vector<1x256xf32>
    %12 = vector.broadcast %11 : vector<1x256xf32> to vector<16x256xf32>
    %13 = arith.addf %10, %12 : vector<16x256xf32>
    %14 = vector.extract_strided_slice %13 {offsets = [0, 0], sizes = [16, 128], strides = [1, 1]} : vector<16x256xf32> to vector<16x128xf32>
    %15 = vector.extract_strided_slice %13 {offsets = [0, 128], sizes = [16, 128], strides = [1, 1]} : vector<16x256xf32> to vector<16x128xf32>
    %cst_11 = arith.constant 5.000000e-01 : f32
    %16 = vector.broadcast %cst_11 : f32 to vector<16x128xf32>
    %17 = arith.mulf %16, %15 : vector<16x128xf32>
    %18 = math.exp %17 : vector<16x128xf32>
    %c0_12 = arith.constant 0 : index
    %c0_13 = arith.constant 0 : index
    %19 = vector.load %arg6[%c0_12, %c0_13] : memref<16x128xbf16, #tpu.memory_space<vmem>>, vector<16x128xbf16>
    %20 = arith.extf %19 : vector<16x128xbf16> to vector<16x128xf32>
    %21 = arith.mulf %18, %20 : vector<16x128xf32>
    %22 = arith.addf %14, %21 : vector<16x128xf32>
    %23 = arith.truncf %22 : vector<16x128xf32> to vector<16x128xbf16>
    %c0_14 = arith.constant 0 : index
    %c0_15 = arith.constant 0 : index
    %24 = vector.load %arg7[%c0_14, %c0_15] : memref<16x384xbf16, #tpu.memory_space<vmem>>, vector<16x128xbf16>
    tpu.vector_store %arg7[%c0_14, %c0_15], %23 {strides = array<i32>} : memref<16x384xbf16, #tpu.memory_space<vmem>>, vector<16x128xbf16>,
    %25 = arith.truncf %14 : vector<16x128xf32> to vector<16x128xbf16>
    %c0_16 = arith.constant 0 : index
    %c128 = arith.constant 128 : index
    %26 = vector.load %arg7[%c0_16, %c128] : memref<16x384xbf16, #tpu.memory_space<vmem>>, vector<16x128xbf16>
    tpu.vector_store %arg7[%c0_16, %c128], %25 {strides = array<i32>} : memref<16x384xbf16, #tpu.memory_space<vmem>>, vector<16x128xbf16>,
    %27 = arith.truncf %15 : vector<16x128xf32> to vector<16x128xbf16>
    %c0_17 = arith.constant 0 : index
    %c256 = arith.constant 256 : index
    %28 = vector.load %arg7[%c0_17, %c256] : memref<16x384xbf16, #tpu.memory_space<vmem>>, vector<16x128xbf16>
    tpu.vector_store %arg7[%c0_17, %c256], %27 {strides = array<i32>} : memref<16x384xbf16, #tpu.memory_space<vmem>>, vector<16x128xbf16>,
    return
  }
  func.func @transform_0(%arg0: i32) -> (i32, i32) {
    %c0_i32 = arith.constant 0 : i32
    %c0_i32_0 = arith.constant 0 : i32
    return %arg0, %c0_i32 : i32, i32
  }
  func.func @transform_1(%arg0: i32) -> (i32, i32) {
    %c0_i32 = arith.constant 0 : i32
    %c0_i32_0 = arith.constant 0 : i32
    %c0_i32_1 = arith.constant 0 : i32
    return %c0_i32, %c0_i32_0 : i32, i32
  }
  func.func @transform_2(%arg0: i32) -> (i32, i32) {
    %c0_i32 = arith.constant 0 : i32
    %c0_i32_0 = arith.constant 0 : i32
    %c0_i32_1 = arith.constant 0 : i32
    return %c0_i32, %c0_i32_0 : i32, i32
  }
  func.func @transform_3(%arg0: i32) -> (i32, i32) {
    %c0_i32 = arith.constant 0 : i32
    %c0_i32_0 = arith.constant 0 : i32
    %c0_i32_1 = arith.constant 0 : i32
    return %c0_i32, %c0_i32_0 : i32, i32
  }
  func.func @transform_4(%arg0: i32) -> (i32, i32) {
    %c0_i32 = arith.constant 0 : i32
    %c0_i32_0 = arith.constant 0 : i32
    %c0_i32_1 = arith.constant 0 : i32
    return %c0_i32, %c0_i32_0 : i32, i32
  }
  func.func @transform_5(%arg0: i32) -> (i32, i32) {
    %c0_i32 = arith.constant 0 : i32
    %c0_i32_0 = arith.constant 0 : i32
    return %arg0, %c0_i32 : i32, i32
  }
  func.func @transform_6(%arg0: i32) -> (i32, i32) {
    %c0_i32 = arith.constant 0 : i32
    %c0_i32_0 = arith.constant 0 : i32
    return %arg0, %c0_i32 : i32, i32
  }
}

</mosaic_0001>

<bundles_post_ra>
// kernel: vae_encoder_forward.1
= control target key start
LH: loop header
LB: loop body
LE: loop exit
PB: predicated region body
PF: predicated region fallthrough
CT: control target
= control target key end

     0   :  { %11 = vsyncpa [#allocation3], 0  ;;  %s584_s0 = inlined_call_operand.vmem [shape: bf16[16,128], index: 0, kind: input, shape index: {}]   ;;  %s585_s1 = inlined_call_operand.hbm [shape: bf16[128,128], index: 1, kind: input, shape index: {}]   ;;  %s586_s2 = inlined_call_operand.vmem [shape: f32[1,128], index: 2, kind: input, shape index: {}]   ;;  %s587_s3 = inlined_call_operand.hbm [shape: bf16[128,256], index: 3, kind: input, shape index: {}]   ;;  %s588_s4 = inlined_call_operand.vmem [shape: f32[1,256], index: 4, kind: input, shape index: {}]   ;;  %s589_s5 = inlined_call_operand.vmem [shape: bf16[16,128], index: 5, kind: input, shape index: {}]   ;;  %s590_s6 = inlined_call_operand.vmem [shape: bf16[16,384], index: 6, kind: output, shape index: {}]  }
   0x1   :  { %s19_s23 = sshll.u32 %s585_s1, 4  ;;  %s20_s23 = int_to_ptr.hbm [resolvable:$true] %s19_s23 }
   0x2   :  { %12 = vsyncpa [#allocation5], 0  ;;  %s513_s24 = smov [#allocation2]   ;;  %s34_s28 = sshll.u32 %s587_s3, 4  ;;  %s35_s28 = int_to_ptr.hbm [resolvable:$true] %s34_s28 }
   0x3   :  { %s21_s25 = sshll.u32 %s513_s24, 4  ;;  %s514_s29 = smov 64   ;;  %s22_s25 = int_to_ptr.vmem [resolvable:$true] %s21_s25 }
   0x4   :  { %s515_s30 = smov 4   ;;  %s516_s7 = smov [#allocation4]  }
   0x5   :  { %27 = dma.hbm_to_vmem [thread:$0]  %s20_s23, 1024, %s22_s25, [#allocation3], %s514_s29, %s514_s29, %s515_s30  }
   0x6   :  { %s36_s8 = sshll.u32 %s516_s7, 4  ;;  %s517_s9 = smov 128   ;;  %s37_s8 = int_to_ptr.vmem [resolvable:$true] %s36_s8 }
   0x7   :  { %s518_s10 = smov 8  }
   0x8   :  { %42 = dma.hbm_to_vmem [thread:$0]  %s35_s28, 2048, %s37_s8, [#allocation5], %s517_s9, %s517_s9, %s518_s10  }
   0x9   :  { %509 = dma.done.wait [#allocation3], 1024  }
   0xa   :  { %510 = vsyncadd [#allocation3], 4294966272 }
   0xb   :  { %511 = dma.done.wait [#allocation5], 2048  }
   0xc   :  { %512 = vsyncadd [#allocation5], 4294965248  ;;  %v418_v0 = vld [vmem:[#allocation2 + $0x38] sm:$0xff]  ;;  %v417_v1 = vld [vmem:[#allocation2 + $0x30] sm:$0xff] }
   0xd   :  { %131 = vmatpush.bf16.msra.mxu0 %v418_v0  ;;  %v404_v2 = vld [vmem:[#allocation4 + $0x70] sm:$0xf]  ;;  %v434_v3 = vld [vmem:[#allocation4 + $0x74] sm:$0xf0]  ;;  %v433_v4 = vld [vmem:[#allocation4 + $0x74] sm:$0xf] }
   0xe   :  { %v405_v5 = vor.u32 %v434_v3, %v404_v2  ;;  %v406_v6 = vld [vmem:[#allocation4 + $0x78] sm:$0xf0]  ;;  %v396_v7 = vld [vmem:[#allocation4 + $0x60] sm:$0xf]  ;;  %v432_v8 = vld [vmem:[#allocation4 + $0x64] sm:$0xf0] }
   0xf   :  { %v409_v9 = vor.u32 %v433_v4, %v406_v6  ;;  %v431_v10 = vld [vmem:[#allocation4 + $0x64] sm:$0xf]  ;;  %v398_v11 = vld [vmem:[#allocation4 + $0x68] sm:$0xf0]  ;;  %v397_v13 = vor.u32 %v432_v8, %v396_v7  ;;  %v388_v15 = vld [vmem:[#allocation4 + $0x50] sm:$0xf] }
  0x10   :  { %v416_v12 = vld [vmem:[#allocation2 + $0x28] sm:$0xff]  ;;  %250 = vmatpush.bf16.msra.mxu1 %v405_v5  ;;  %v401_v14 = vor.u32 %v431_v10, %v398_v11  ;;  %v430_v16 = vld [vmem:[#allocation4 + $0x54] sm:$0xf0]  ;;  %v429_v17 = vld [vmem:[#allocation4 + $0x54] sm:$0xf] }
  0x11   :  { %132 = vmatpush.bf16.msra.mxu0 %v417_v1  ;;  %264 = vmatpush.bf16.msra.mxu2 %v409_v9  ;;  %v390_v18 = vld [vmem:[#allocation4 + $0x58] sm:$0xf0]  ;;  %v415_v19 = vld [vmem:[#allocation2 + $0x20] sm:$0xff]  ;;  %v389_v20 = vor.u32 %v430_v16, %v388_v15  ;;  %v428_v23 = vld [vmem:[#allocation4 + $0x44] sm:$0xf0] }
  0x12   :  { %v393_v21 = vor.u32 %v429_v17, %v390_v18  ;;  %v380_v22 = vld [vmem:[#allocation4 + $0x40] sm:$0xf]  ;;  %v427_v24 = vld [vmem:[#allocation4 + $0x44] sm:$0xf]  ;;  %v382_v25 = vld [vmem:[#allocation4 + $0x48] sm:$0xf0] }
  0x13   :  { %v414_v26 = vld [vmem:[#allocation2 + $0x18] sm:$0xff]  ;;  %v381_v27 = vor.u32 %v428_v23, %v380_v22  ;;  %v385_v28 = vor.u32 %v427_v24, %v382_v25  ;;  %v413_v29 = vld [vmem:[#allocation2 + $0x10] sm:$0xff]  ;;  %v412_v30 = vld [vmem:[#allocation2 + $0x8] sm:$0xff] }
  0x14   :  { %251 = vmatpush.bf16.msra.mxu1 %v397_v13  ;;  %v411_v31 = vld [vmem:[#allocation2] sm:$0xff]  ;;  %v372_v33 = vld [vmem:[#allocation4 + $0x30] sm:$0xf]  ;;  %v426_v34 = vld [vmem:[#allocation4 + $0x34] sm:$0xf0] }
  0x15   :  { %133 = vmatpush.bf16.msra.mxu0 %v416_v12  ;;  %265 = vmatpush.bf16.msra.mxu2 %v401_v14  ;;  %v410_v32 = vld [vmem:[%s584_s0] sm:$0xff]  ;;  %v425_v35 = vld [vmem:[#allocation4 + $0x34] sm:$0xf]  ;;  %v373_v36 = vor.u32 %v426_v34, %v372_v33  ;;  %v374_v37 = vld [vmem:[#allocation4 + $0x38] sm:$0xf0] }
  0x16   :  { %v377_v38 = vor.u32 %v425_v35, %v374_v37  ;;  %v364_v39 = vld [vmem:[#allocation4 + $0x20] sm:$0xf]  ;;  %v424_v40 = vld [vmem:[#allocation4 + $0x24] sm:$0xf0]  ;;  %v423_v41 = vld [vmem:[#allocation4 + $0x24] sm:$0xf] }
  0x17   :  { %v365_v42 = vor.u32 %v424_v40, %v364_v39  ;;  %v366_v43 = vld [vmem:[#allocation4 + $0x28] sm:$0xf0]  ;;  %v356_v45 = vld [vmem:[#allocation4 + $0x10] sm:$0xf]  ;;  %v422_v46 = vld [vmem:[#allocation4 + $0x14] sm:$0xf0] }
  0x18   :  { %252 = vmatpush.bf16.msra.mxu1 %v389_v20  ;;  %v369_v44 = vor.u32 %v423_v41, %v366_v43  ;;  %v421_v47 = vld [vmem:[#allocation4 + $0x14] sm:$0xf]  ;;  %v357_v48 = vor.u32 %v422_v46, %v356_v45  ;;  %v358_v49 = vld [vmem:[#allocation4 + $0x18] sm:$0xf0]  ;;  %v348_v51 = vld [vmem:[#allocation4] sm:$0xf] }
  0x19   :  { %134 = vmatpush.bf16.msra.mxu0 %v415_v19  ;;  %266 = vmatpush.bf16.msra.mxu2 %v393_v21  ;;  %v361_v50 = vor.u32 %v421_v47, %v358_v49  ;;  %v420_v52 = vld [vmem:[#allocation4 + $0x4] sm:$0xf0]  ;;  %v419_v53 = vld [vmem:[#allocation4 + $0x4] sm:$0xf]  ;;  %v350_v55 = vld [vmem:[#allocation4 + $0x8] sm:$0xf0] }
  0x1a   :  { %v349_v54 = vor.u32 %v420_v52, %v348_v51  ;;  %v353_v56 = vor.u32 %v419_v53, %v350_v55  ;;  %v456_v58 = vld [vmem:[%s586_s2] ss:$0 sm:$0xff] }
  0x1b   :  { %v164_v1 = vld [vmem:[%s588_s4] sm:$0x3] }
  0x1c   :  { %253 = vmatpush.bf16.msra.mxu1 %v381_v27  ;;  %v167_v3 = vperm.slane %v164_v1, 1  ;;  %v166_v10 = vperm.slane %v164_v1, 0  ;;  %v436_v11 = vld [vmem:[%s589_s5] sm:$0xff]  }
  0x1d   :  { %135 = vmatpush.bf16.msra.mxu0 %v414_v26  ;;  %267 = vmatpush.bf16.msra.mxu2 %v385_v28  ;;  %v437_v15 = vunpack.c.l.bf16 %v436_v11  ;;  %v438_v24 = vunpack.c.h.bf16 %v436_v11 }
  0x20   :  { %254 = vmatpush.bf16.msra.mxu1 %v373_v36 }
  0x21   :  { %136 = vmatpush.bf16.msra.mxu0 %v413_v29  ;;  %268 = vmatpush.bf16.msra.mxu2 %v377_v38 }
  0x24   :  { %255 = vmatpush.bf16.msra.mxu1 %v365_v42 }
  0x25   :  { %137 = vmatpush.bf16.msra.mxu0 %v412_v30  ;;  %269 = vmatpush.bf16.msra.mxu2 %v369_v44 }
  0x28   :  { %256 = vmatpush.bf16.msra.mxu1 %v357_v48 }
  0x29   :  { %138 = vmatpush.bf16.msra.mxu0 %v411_v31  ;;  %270 = vmatpush.bf16.msra.mxu2 %v361_v50 }
  0x2c   :  { %139 = vmatmul.bf16.vlgmr.msra.gmra.mxu0 %v410_v32  ;;  %257 = vmatpush.bf16.msra.mxu1 %v349_v54 }
  0x2d   :  { %271 = vmatpush.bf16.msra.mxu2 %v353_v56 }
  0xa9   :  { %v140_v57 = vpop.f32.mrf.mxu0 }
  0xaa   :  { %v141_v59 = vadd.f32 %v456_v58, %v140_v57 }
  0xac   :  { %v145_v62 = vmax.f32 %v141_v59, 0.0 }
  0xb1   :  { %v142_v60 = vpop.f32.mrf.mxu0 }
  0xb2   :  { %v143_v61 = vadd.f32 %v456_v58, %v142_v60 }
  0xb4   :  { %v146_v63 = vmax.f32 %v143_v61, 0.0 }
  0xb6   :  { %v147_v0 = vpack.c.bf16 %v146_v63, %v145_v62 }
  0xb8   :  { %258 = vmatmul.bf16.vlgmr.msra.gmra.mxu1 %v147_v0  ;;  %272 = vmatmul.bf16.vlgmr.msra.gmra.mxu2 %v147_v0 }
 0x135   :  { %v259_v2 = vpop.f32.mrf.mxu1 }
 0x136   :  { %v260_v20 = vadd.f32 %v259_v2, %v166_v10 }
 0x13b   :  { %v273_v4 = vpop.f32.mrf.mxu2 }
 0x13c   :  { %v274_v5 = vadd.f32 %v273_v4, %v167_v3 }
 0x13d   :  { %v261_v9 = vpop.f32.mrf.mxu1 }
 0x13e   :  { %v278_v6 = vmul.f32 0.5, %v274_v5  ;;  %v300_v7 = vpack.c.bf16 %v274_v5, %v274_v5  ;;  %v262_v13 = vadd.f32 %v261_v9, %v166_v10 }
 0x140   :  { %v280_v8 = vmul.f32 1.442695, %v278_v6  ;;  %302 = vst [vmem:[%s590_s6 + $0x8] sm:$0xf] %v300_v7 }
 0x142   :  { %457 = vpow2.f32 %v280_v8 }
 0x143   :  { %v275_v12 = vpop.f32.mrf.mxu2 }
 0x144   :  { %v276_v14 = vadd.f32 %v275_v12, %v167_v3 }
 0x146   :  { %v279_v16 = vmul.f32 0.5, %v276_v14  ;;  %v447_v17 = vpack.c.bf16 %v276_v14, %v262_v13 }
 0x148   :  { %v458_v18 = vpop.eup %457  ;;  %v282_v19 = vmul.f32 1.442695, %v279_v16  ;;  %449 = vst [vmem:[%s590_s6 + $0x10] sm:$0xff] %v447_v17  }
 0x149   :  { %v288_v21 = vmul.f32 %v458_v18, %v437_v15 }
 0x14a   :  { %459 = vpow2.f32 %v282_v19 }
 0x14b   :  { %v290_v22 = vadd.f32 %v288_v21, %v260_v20 }
 0x14d   :  { %v442_v23 = vpack.c.bf16 %v260_v20, %v290_v22 }
 0x14f   :  { %443 = vst [vmem:[%s590_s6] sm:$0xff] %v442_v23  }
 0x150   :  { %v460_v25 = vpop.eup %459 }
 0x151   :  { %v289_v26 = vmul.f32 %v460_v25, %v438_v24 }
 0x153   :  { %v291_v27 = vadd.f32 %v289_v26, %v262_v13 }
 0x155   :  { %v293_v28 = vpack.c.bf16 %v291_v27, %v291_v27 }
 0x157   :  { %295 = vst [vmem:[%s590_s6 + $0xc] sm:$0xf] %v293_v28 }
 0x158   :  { %308 = vsyncpa [#allocation3], 1 }
 0x159   :  { %309 = vsyncpa [#allocation5], 1 }

</bundles_post_ra>
